<compile_context>
chip_gen: v7x
topology: tpu7x:2x2x1
jax: 0.10.0
libtpu: 0.0.40
codegen_flags: <defaults>
</compile_context>

<pallas_src>
import functools

import jax
import jax.numpy as jnp
from jax.experimental import pallas as pl
from jax.experimental.pallas import tpu as pltpu


# ----------------------------------------------------------------------------
# Network configuration (mirrors `layer_configurations` in the PyTorch module)
#   (in_features, out_features, nonlinearity)
# ----------------------------------------------------------------------------
LAYER_CONFIGS = (
    (32, 64, "ReLu"),
    (64, 32, "tanh"),
    (32, 16, "sigmoid"),
)

PACK = 8  # row-group packing factor: 8 rows packed side-by-side into lanes


def _round_up(n, m):
    return (n + m - 1) // m * m


def _apply_nonlinear(h, kind):
    # Kept in f32: v5e has no bf16 VPU/EUP path; transcendentals ride the
    # otherwise-idle EUP slot on every generation.
    if kind == "ReLu":
        return jnp.maximum(h, 0.0)
    if kind == "tanh":
        return jnp.tanh(h)
    if kind == "sigmoid":
        return jax.nn.sigmoid(h)
    if kind == "noop":
        return h
    raise ValueError(f"unknown nonlinearity {kind!r}")


def _mlp_kernel(*refs, nonlins, compute_dtype):
    """Fused MLP on row-group-packed (lane-dense) data.

    refs = (x_ref, w0, b0, w1, b1, ..., out_ref); weights are block-diagonal
    kron(I_PACK, W), biases tiled PACK times, so the packed layout is exact.
    """
    x_ref = refs[0]
    out_ref = refs[-1]
    param_refs = refs[1:-1]

    h = x_ref[...]                                   # (tile, PACK*embed) f32
    n_layers = len(nonlins)
    for li, nonlin in enumerate(nonlins):
        w_ref = param_refs[2 * li]
        b_ref = param_refs[2 * li + 1]
        h = jnp.dot(h.astype(compute_dtype), w_ref[...],
                    preferred_element_type=jnp.float32)
        h = h + b_ref[...]                           # (1, PACK*out) broadcasts
        if li == n_layers - 2:
            # TODO(synk): Dropout(p=0.5) sits here in the PyTorch module; it is
            # identity at inference.  Training-mode dropout would use
            # pltpu.prng_seed / pltpu.prng_random_bits.
            pass
        h = _apply_nonlinear(h, nonlin)
    out_ref[...] = h.astype(out_ref.dtype)


def dense_network_forward(x, params, configs, *, packed_tile=None,
                          use_bf16_matmul=False):
    """x: (batch, seq, embed) float32.  params: list of (W(in,out), b(1,out))."""
    batch, seq, embed = x.shape
    assert embed == configs[0][0]
    out_dim = configs[-1][1]
    rows = batch * seq

    # --- row-group packing: free row-major views (no extra HBM traffic) -----
    padded_rows = _round_up(rows, PACK)
    x2d = x.reshape(rows, embed).astype(jnp.float32)
    if padded_rows != rows:                  # rare fallback: pad <= 7 rows
        x2d = jnp.pad(x2d, ((0, padded_rows - rows), (0, 0)))
    packed_rows = padded_rows // PACK
    x_packed = x2d.reshape(packed_rows, PACK * embed)   # (P, 256) lane-dense

    # --- tile selection ------------------------------------------------------
    # Aim for >=4 grid steps (v7x 2-TC sharding + pipelining) once each step
    # still carries >=512 packed rows (~0.75 MiB I/O, amortizes ~0.35us/step);
    # cap at 1024 packed rows (8192 original rows) so double-buffered blocks +
    # intermediates stay ~10 MiB, safe even under v7x's smaller VMEM.
    if packed_tile is None:
        target = max(pl.cdiv(packed_rows, 4), 512)
        packed_tile = min(1024, _round_up(target, 8), _round_up(packed_rows, 8))
    packed_tile = max(8, _round_up(packed_tile, 8))
    num_blocks = pl.cdiv(packed_rows, packed_tile)   # partial last block OK

    # --- packed (block-diagonal) weights / tiled biases ----------------------
    compute_dtype = jnp.bfloat16 if use_bf16_matmul else jnp.float32
    eye = jnp.eye(PACK, dtype=jnp.float32)
    flat_params = []
    nonlins = []
    in_specs = [pl.BlockSpec((packed_tile, PACK * embed), lambda i: (i, 0))]
    for (w, b), (_, _, nonlin) in zip(params, configs):
        w_bd = jnp.kron(eye, w.astype(jnp.float32)).astype(compute_dtype)
        b_bd = jnp.tile(b.reshape(1, -1).astype(jnp.float32), (1, PACK))
        flat_params.extend([w_bd, b_bd])
        # Grid-invariant operands: constant block index -> DMA'd once.
        in_specs.append(pl.BlockSpec(w_bd.shape, lambda i: (0, 0)))
        in_specs.append(pl.BlockSpec(b_bd.shape, lambda i: (0, 0)))
        nonlins.append(nonlin)

    kernel = functools.partial(_mlp_kernel, nonlins=tuple(nonlins),
                               compute_dtype=compute_dtype)

    weight_bytes = sum(int(p.size) * p.dtype.itemsize for p in flat_params)
    cost = pl.CostEstimate(
        flops=2 * packed_rows * sum((PACK * fi) * (PACK * fo)
                                    for fi, fo, _ in configs),
        transcendentals=packed_rows * PACK * sum(
            fo for _, fo, nl in configs if nl in ("tanh", "sigmoid")),
        bytes_accessed=4 * packed_rows * PACK * (embed + out_dim) + weight_bytes,
    )

    out_packed = pl.pallas_call(
        kernel,
        out_shape=jax.ShapeDtypeStruct((packed_rows, PACK * out_dim),
                                       jnp.float32),
        grid=(num_blocks,),
        in_specs=in_specs,
        out_specs=pl.BlockSpec((packed_tile, PACK * out_dim), lambda i: (i, 0)),
        compiler_params=pltpu.CompilerParams(
            dimension_semantics=("parallel",),
            vmem_limit_bytes=32 * 1024 * 1024,
        ),
        cost_estimate=cost,
    )(x_packed, *flat_params)

    # Free row-major view back to (rows, out_dim); slice only if we padded.
    out2d = out_packed.reshape(padded_rows, out_dim)
    if padded_rows != rows:
        out2d = out2d[:rows]
    return out2d.reshape(batch, seq, out_dim)


def init_params(configs, key):
    """Deterministic init mirroring the PyTorch module:
       weight ~ N(0, 0.1), bias = 0.1.  Weights stored transposed (in, out)."""
    params = []
    for (fan_in, fan_out, _) in configs:
        key, sub = jax.random.split(key)
        w = (0.1 * jax.random.normal(sub, (fan_out, fan_in),
                                     dtype=jnp.float32)).T
        b = jnp.full((1, fan_out), 0.1, dtype=jnp.float32)
        params.append((jnp.asarray(w), b))
    return params


def reference_forward(x, params, configs):
    """Pure-JAX reference (same math) for a sanity check."""
    batch, seq, _ = x.shape
    h = x.reshape(batch * seq, -1).astype(jnp.float32)
    for (w, b), (_, _, nonlin) in zip(params, configs):
        h = h @ w + b
        h = _apply_nonlinear(h, nonlin)
    return h.reshape(batch, seq, configs[-1][1])


if __name__ == "__main__":
    key = jax.random.PRNGKey(0)
    key, k1, k2, k3 = jax.random.split(key, 4)
    params = init_params(LAYER_CONFIGS, key)
    embed = LAYER_CONFIGS[0][0]
    out_dim = LAYER_CONFIGS[-1][1]

    # Case 1: small shapes consistent with the module (batch=2, seq=8, embed=32).
    x1 = jax.random.normal(k1, (2, 8, embed), dtype=jnp.float32)
    o1 = jax.block_until_ready(dense_network_forward(x1, params, LAYER_CONFIGS))
    r1 = reference_forward(x1, params, LAYER_CONFIGS)
    assert o1.shape == (2, 8, out_dim)
    assert jnp.allclose(o1, r1, atol=1e-5, rtol=1e-5)

    # Case 2: rows not a multiple of PACK (exercises the pad-to-8 fallback).
    x2 = jax.random.normal(k2, (3, 5, embed), dtype=jnp.float32)
    o2 = jax.block_until_ready(dense_network_forward(x2, params, LAYER_CONFIGS))
    r2 = reference_forward(x2, params, LAYER_CONFIGS)
    assert o2.shape == (3, 5, out_dim)
    assert jnp.allclose(o2, r2, atol=1e-5, rtol=1e-5)

    # Case 3: multi-step grid with a partial (masked) last block.
    x3 = jax.random.normal(k3, (2, 100, embed), dtype=jnp.float32)
    o3 = jax.block_until_ready(
        dense_network_forward(x3, params, LAYER_CONFIGS, packed_tile=16))
    r3 = reference_forward(x3, params, LAYER_CONFIGS)
    assert o3.shape == (2, 100, out_dim)
    assert jnp.allclose(o3, r3, atol=1e-5, rtol=1e-5)

    # Case 4: optional bf16 matmul operands (v5e/v6e MXU lever), relaxed tol.
    o4 = jax.block_until_ready(
        dense_network_forward(x1, params, LAYER_CONFIGS, use_bf16_matmul=True))
    assert jnp.allclose(o4, r1, atol=3e-2, rtol=3e-2)

    print("KERNEL_OK")
</pallas_src>

<mosaic_0001>
module attributes {stable_mosaic.version = 11 : i64} {
  func.func @_mlp_kernel(%arg0: i32, %arg1: memref<8x256xf32, #tpu.memory_space<vmem>>, %arg2: memref<256x512xf32, #tpu.memory_space<vmem>>, %arg3: memref<1x512xf32, #tpu.memory_space<vmem>>, %arg4: memref<512x256xf32, #tpu.memory_space<vmem>>, %arg5: memref<1x256xf32, #tpu.memory_space<vmem>>, %arg6: memref<256x128xf32, #tpu.memory_space<vmem>>, %arg7: memref<1x128xf32, #tpu.memory_space<vmem>>, %arg8: memref<8x128xf32, #tpu.memory_space<vmem>>) attributes {dimension_semantics = [#tpu.dimension_semantics<parallel>], iteration_bounds = array<i64: 1>, scalar_prefetch = 0 : i64, scratch_operands = 0 : i64, tpu.core_type = #tpu.core_type<tc>, window_params = [{transform_indices = @transform_0, window_bounds = array<i64: 8, 256>}, {pipeline_mode = #tpu.pipeline_mode<synchronous>, transform_indices = @transform_1, window_bounds = array<i64: 256, 512>}, {pipeline_mode = #tpu.pipeline_mode<synchronous>, transform_indices = @transform_2, window_bounds = array<i64: 1, 512>}, {pipeline_mode = #tpu.pipeline_mode<synchronous>, transform_indices = @transform_3, window_bounds = array<i64: 512, 256>}, {pipeline_mode = #tpu.pipeline_mode<synchronous>, transform_indices = @transform_4, window_bounds = array<i64: 1, 256>}, {pipeline_mode = #tpu.pipeline_mode<synchronous>, transform_indices = @transform_5, window_bounds = array<i64: 256, 128>}, {pipeline_mode = #tpu.pipeline_mode<synchronous>, transform_indices = @transform_6, window_bounds = array<i64: 1, 128>}, {transform_indices = @transform_7, window_bounds = array<i64: 8, 128>}]} {
    %c0 = arith.constant 0 : index
    %c0_0 = arith.constant 0 : index
    %0 = vector.load %arg1[%c0, %c0_0] : memref<8x256xf32, #tpu.memory_space<vmem>>, vector<8x256xf32>
    %c0_1 = arith.constant 0 : index
    %c0_2 = arith.constant 0 : index
    %1 = vector.load %arg2[%c0_1, %c0_2] : memref<256x512xf32, #tpu.memory_space<vmem>>, vector<256x512xf32>
    %cst = arith.constant dense<0.000000e+00> : vector<8x512xf32>
    %2 = tpu.matmul %0, %1, %cst {dimension_numbers = #tpu.dot_dimension_numbers<[1], [0], [0], [1], [0, 0, 1, 1], [], []>} : vector<8x256xf32>, vector<256x512xf32>, vector<8x512xf32> -> vector<8x512xf32>
    %c0_3 = arith.constant 0 : index
    %c0_4 = arith.constant 0 : index
    %3 = vector.load %arg3[%c0_3, %c0_4] : memref<1x512xf32, #tpu.memory_space<vmem>>, vector<1x512xf32>
    %4 = vector.broadcast %3 : vector<1x512xf32> to vector<8x512xf32>
    %5 = arith.addf %2, %4 : vector<8x512xf32>
    %cst_5 = arith.constant 0.000000e+00 : f32
    %6 = vector.broadcast %cst_5 : f32 to vector<8x512xf32>
    %7 = arith.maximumf %5, %6 : vector<8x512xf32>
    %c0_6 = arith.constant 0 : index
    %c0_7 = arith.constant 0 : index
    %8 = vector.load %arg4[%c0_6, %c0_7] : memref<512x256xf32, #tpu.memory_space<vmem>>, vector<512x256xf32>
    %cst_8 = arith.constant dense<0.000000e+00> : vector<8x256xf32>
    %9 = tpu.matmul %7, %8, %cst_8 {dimension_numbers = #tpu.dot_dimension_numbers<[1], [0], [0], [1], [0, 0, 1, 1], [], []>} : vector<8x512xf32>, vector<512x256xf32>, vector<8x256xf32> -> vector<8x256xf32>
    %c0_9 = arith.constant 0 : index
    %c0_10 = arith.constant 0 : index
    %10 = vector.load %arg5[%c0_9, %c0_10] : memref<1x256xf32, #tpu.memory_space<vmem>>, vector<1x256xf32>
    %11 = vector.broadcast %10 : vector<1x256xf32> to vector<8x256xf32>
    %12 = arith.addf %9, %11 : vector<8x256xf32>
    %13 = math.tanh %12 : vector<8x256xf32>
    %c0_11 = arith.constant 0 : index
    %c0_12 = arith.constant 0 : index
    %14 = vector.load %arg6[%c0_11, %c0_12] : memref<256x128xf32, #tpu.memory_space<vmem>>, vector<256x128xf32>
    %cst_13 = arith.constant dense<0.000000e+00> : vector<8x128xf32>
    %15 = tpu.matmul %13, %14, %cst_13 {dimension_numbers = #tpu.dot_dimension_numbers<[1], [0], [0], [1], [0, 0, 1, 1], [], []>} : vector<8x256xf32>, vector<256x128xf32>, vector<8x128xf32> -> vector<8x128xf32>
    %c0_14 = arith.constant 0 : index
    %c0_15 = arith.constant 0 : index
    %16 = vector.load %arg7[%c0_14, %c0_15] : memref<1x128xf32, #tpu.memory_space<vmem>>, vector<1x128xf32>
    %17 = vector.broadcast %16 : vector<1x128xf32> to vector<8x128xf32>
    %18 = arith.addf %15, %17 : vector<8x128xf32>
    %19 = arith.negf %18 : vector<8x128xf32>
    %20 = math.exp %19 : vector<8x128xf32>
    %cst_16 = arith.constant 1.000000e+00 : f32
    %21 = vector.broadcast %cst_16 : f32 to vector<8x128xf32>
    %22 = arith.addf %21, %20 : vector<8x128xf32>
    %23 = arith.divf %21, %22 : vector<8x128xf32>
    %c0_17 = arith.constant 0 : index
    %c0_18 = arith.constant 0 : index
    %24 = vector.load %arg8[%c0_17, %c0_18] : memref<8x128xf32, #tpu.memory_space<vmem>>, vector<8x128xf32>
    tpu.vector_store %arg8[%c0_17, %c0_18], %23 {strides = array<i32>} : memref<8x128xf32, #tpu.memory_space<vmem>>, vector<8x128xf32>,
    return
  }
  func.func @transform_0(%arg0: i32) -> (i32, i32) {
    %c0_i32 = arith.constant 0 : i32
    %c0_i32_0 = arith.constant 0 : i32
    return %arg0, %c0_i32 : i32, i32
  }
  func.func @transform_1(%arg0: i32) -> (i32, i32) {
    %c0_i32 = arith.constant 0 : i32
    %c0_i32_0 = arith.constant 0 : i32
    %c0_i32_1 = arith.constant 0 : i32
    return %c0_i32, %c0_i32_0 : i32, i32
  }
  func.func @transform_2(%arg0: i32) -> (i32, i32) {
    %c0_i32 = arith.constant 0 : i32
    %c0_i32_0 = arith.constant 0 : i32
    %c0_i32_1 = arith.constant 0 : i32
    return %c0_i32, %c0_i32_0 : i32, i32
  }
  func.func @transform_3(%arg0: i32) -> (i32, i32) {
    %c0_i32 = arith.constant 0 : i32
    %c0_i32_0 = arith.constant 0 : i32
    %c0_i32_1 = arith.constant 0 : i32
    return %c0_i32, %c0_i32_0 : i32, i32
  }
  func.func @transform_4(%arg0: i32) -> (i32, i32) {
    %c0_i32 = arith.constant 0 : i32
    %c0_i32_0 = arith.constant 0 : i32
    %c0_i32_1 = arith.constant 0 : i32
    return %c0_i32, %c0_i32_0 : i32, i32
  }
  func.func @transform_5(%arg0: i32) -> (i32, i32) {
    %c0_i32 = arith.constant 0 : i32
    %c0_i32_0 = arith.constant 0 : i32
    %c0_i32_1 = arith.constant 0 : i32
    return %c0_i32, %c0_i32_0 : i32, i32
  }
  func.func @transform_6(%arg0: i32) -> (i32, i32) {
    %c0_i32 = arith.constant 0 : i32
    %c0_i32_0 = arith.constant 0 : i32
    %c0_i32_1 = arith.constant 0 : i32
    return %c0_i32, %c0_i32_0 : i32, i32
  }
  func.func @transform_7(%arg0: i32) -> (i32, i32) {
    %c0_i32 = arith.constant 0 : i32
    %c0_i32_0 = arith.constant 0 : i32
    return %arg0, %c0_i32 : i32, i32
  }
}

</mosaic_0001>

<bundles_post_ra>
// kernel: tpu_custom_call.1
= control target key start
LH: loop header
LB: loop body
LE: loop exit
PB: predicated region body
PF: predicated region fallthrough
CT: control target
= control target key end

     0   :  { %12 = vsyncpa [#allocation3], 0  ;;  %s1461_s0 = inlined_call_operand.hbm [shape: f32[2,256], index: 0, kind: input, shape index: {}]   ;;  %s1462_s1 = inlined_call_operand.hbm [shape: f32[256,512], index: 1, kind: input, shape index: {}]   ;;  %s1463_s2 = inlined_call_operand.vmem [shape: f32[1,512], index: 2, kind: input, shape index: {}]   ;;  %s1464_s3 = inlined_call_operand.hbm [shape: f32[512,256], index: 3, kind: input, shape index: {}]   ;;  %s1465_s4 = inlined_call_operand.vmem [shape: f32[1,256], index: 4, kind: input, shape index: {}]   ;;  %s1466_s5 = inlined_call_operand.hbm [shape: f32[256,128], index: 5, kind: input, shape index: {}]   ;;  %s1467_s6 = inlined_call_operand.vmem [shape: f32[1,128], index: 6, kind: input, shape index: {}]   ;;  %s1468_s7 = inlined_call_operand.hbm [shape: f32[2,128], index: 7, kind: output, shape index: {}]  }
   0x1   :  { %13 = vsyncpa [#allocation6], 0 }
   0x2   :  { %14 = vsyncpa [#allocation9], 0 }
   0x3   :  { %15 = vsyncpa [#allocation4], 0 }
   0x4   :  { %20 = vsyncadd [#allocation3], 192  ;;  %s1299_s24 = smov [#allocation5]   ;;  %s1181_s28 = scalar_lea.hbm %s1462_s1, 16384 }
   0x5   :  { %s33_s25 = sshll.u32 %s1299_s24, 4  ;;  %p1182_p0 = scmp.ne.s32.totalorder %s1462_s1, %s1181_s28  ;;  %s34_s25 = int_to_ptr.vmem [resolvable:$true] %s33_s25 }
   0x6   :  { %p1185_p1 = scmp.lt.u32.totalorder %s1181_s28, %s1462_s1 }
   0x8   :  { %p1187_p2 = pnand %p1185_p1, %p1182_p0 }
   0xa   :  { %1190 = shalt.err (!%p1187_p2)
}
   0xb   :  { %s1191_s10 = scalar_lea.vmem %s34_s25, 16384  ;;  %p1196_p4 = scmp.lt.s32.totalorder %s34_s25, %s34_s25 }
   0xc   :  { %p1192_p3 = scmp.ne.s32.totalorder %s34_s25, %s1191_s10  ;;  %p1197_p5 = scmp.lt.s32.totalorder %s1191_s10, %s1191_s10 }
   0xe   :  { %p1198_p6 = por %p1197_p5, %p1196_p4 }
  0x10   :  { %p1199_p7 = pnand %p1198_p6, %p1192_p3 }
  0x12   :  { %1202 = shalt.err (!%p1199_p7)
}
  0x13   :  { %s1300_s11 = smov 512   ;;  %s1301_s12 = smov 32  }
  0x14   :  { %39 = dma.hbm_to_vmem [thread:$0]  %s1462_s1, 16384, %s34_s25, [#allocation6], %s1300_s11, %s1300_s11, %s1301_s12  }
  0x15   :  { %s1302_s15 = smov [#allocation2]   ;;  %s1203_s19 = scalar_lea.hbm %s1461_s0, 64 }
  0x16   :  { %s21_s16 = sshll.u32 %s1302_s15, 4  ;;  %p1204_p8 = scmp.ne.s32.totalorder %s1461_s0, %s1203_s19  ;;  %s22_s16 = int_to_ptr.vmem [resolvable:$true] %s21_s16 }
  0x17   :  { %p1207_p9 = scmp.lt.u32.totalorder %s1203_s19, %s1461_s0 }
  0x19   :  { %p1209_p10 = pnand %p1207_p9, %p1204_p8 }
  0x1b   :  { %1212 = shalt.err (!%p1209_p10)
}
  0x1c   :  { %s1213_s24 = scalar_lea.vmem %s22_s16, 64  ;;  %s1217_s1 = scalar_lea.vmem %s22_s16, 256 }
  0x1d   :  { %p1214_p11 = scmp.ne.s32.totalorder %s22_s16, %s1213_s24  ;;  %p1218_p12 = scmp.lt.s32.totalorder %s22_s16, %s22_s16 }
  0x1e   :  { %p1219_p13 = scmp.lt.s32.totalorder %s1217_s1, %s1213_s24 }
  0x20   :  { %p1220_p0 = por %p1219_p13, %p1218_p12 }
  0x22   :  { %p1221_p1 = pnand %p1220_p0, %p1214_p11 }
  0x24   :  { %1224 = shalt.err (!%p1221_p1)
}
  0x25   :  { %s1303_s25 = smov 64   ;;  %s1304_s26 = smov 4  }
  0x26   :  { %27 = dma.hbm_to_vmem [thread:$0]  %s1461_s0, 64, %s22_s16, [#allocation3], %s1303_s25, %s1303_s25, %s1304_s26  }
  0x27   :  { %s1305_s29 = smov [#allocation7]   ;;  %s1225_s10 = scalar_lea.hbm %s1464_s3, 16384 }
  0x28   :  { %s47_s30 = sshll.u32 %s1305_s29, 4  ;;  %p1226_p2 = scmp.ne.s32.totalorder %s1464_s3, %s1225_s10  ;;  %s48_s30 = int_to_ptr.vmem [resolvable:$true] %s47_s30 }
  0x29   :  { %p1229_p3 = scmp.lt.u32.totalorder %s1225_s10, %s1464_s3 }
  0x2b   :  { %p1231_p4 = pnand %p1229_p3, %p1226_p2 }
  0x2d   :  { %1234 = shalt.err (!%p1231_p4)
}
  0x2e   :  { %s1235_s17 = scalar_lea.vmem %s48_s30, 16384  ;;  %p1240_p6 = scmp.lt.s32.totalorder %s48_s30, %s48_s30 }
  0x2f   :  { %p1236_p5 = scmp.ne.s32.totalorder %s48_s30, %s1235_s17  ;;  %p1241_p7 = scmp.lt.s32.totalorder %s1235_s17, %s1235_s17 }
  0x31   :  { %p1242_p8 = por %p1241_p7, %p1240_p6 }
  0x33   :  { %p1243_p9 = pnand %p1242_p8, %p1236_p5 }
  0x35   :  { %1246 = shalt.err (!%p1243_p9)
}
  0x36   :  { %s1306_s0 = smov 256   ;;  %s1307_s16 = smov 16  }
  0x37   :  { %53 = dma.hbm_to_vmem [thread:$0]  %s1464_s3, 16384, %s48_s30, [#allocation6], %s1306_s0, %s1306_s0, %s1307_s16  }
  0x38   :  { %s1308_s20 = smov [#allocation8]   ;;  %s1247_s24 = scalar_lea.hbm %s1466_s5, 4096 }
  0x39   :  { %s61_s21 = sshll.u32 %s1308_s20, 4  ;;  %p1248_p10 = scmp.ne.s32.totalorder %s1466_s5, %s1247_s24  ;;  %s62_s21 = int_to_ptr.vmem [resolvable:$true] %s61_s21 }
  0x3a   :  { %p1251_p11 = scmp.lt.u32.totalorder %s1247_s24, %s1466_s5 }
  0x3c   :  { %p1253_p12 = pnand %p1251_p11, %p1248_p10 }
  0x3e   :  { %1256 = shalt.err (!%p1253_p12)
}
  0x3f   :  { %s1257_s28 = scalar_lea.vmem %s62_s21, 4096  ;;  %p1262_p0 = scmp.lt.s32.totalorder %s62_s21, %s62_s21 }
  0x40   :  { %p1258_p13 = scmp.ne.s32.totalorder %s62_s21, %s1257_s28  ;;  %p1263_p1 = scmp.lt.s32.totalorder %s1257_s28, %s1257_s28 }
  0x42   :  { %p1264_p2 = por %p1263_p1, %p1262_p0 }
  0x44   :  { %p1265_p3 = pnand %p1264_p2, %p1258_p13 }
  0x46   :  { %1268 = shalt.err (!%p1265_p3)
}
  0x47   :  { %s1309_s3 = smov 128   ;;  %s1310_s29 = smov 8  }
  0x48   :  { %67 = dma.hbm_to_vmem [thread:$0]  %s1466_s5, 4096, %s62_s21, [#allocation9], %s1309_s3, %s1309_s3, %s1310_s29  }
  0x49   :  { %1291 = dma.done.wait [#allocation3], 256  }
  0x4a   :  { %1292 = vsyncadd [#allocation3], 4294967040 }
  0x4b   :  { %1293 = dma.done.wait [#allocation6], 32768  }
  0x4c   :  { %1294 = vsyncadd [#allocation6], 4294934528 }
  0x4d   :  { %1295 = dma.done.wait [#allocation9], 4096  }
  0x4e   :  { %1296 = vsyncadd [#allocation9], 4294963200  ;;  %v87_v0 = vld [vmem:[#allocation5 + $0x8] sm:$0xff]  ;;  %v86_v2 = vld [vmem:[#allocation5] sm:$0xff]  ;;  %v216_v26 = vlaneseq }
  0x4f   :  { %v91_v1 = vld [vmem:[#allocation5 + $0x28] sm:$0xff]  ;;  %v90_v4 = vld [vmem:[#allocation5 + $0x20] sm:$0xff]  ;;  %v1404_v45 = vld.sshfl [vmem:[#allocation2] sm:$0xff pattern:$0x76325410] }
  0x50   :  { %v862_v3 = vpack.c.bf16 %v91_v1, %v87_v0  ;;  %v95_v5 = vld [vmem:[#allocation5 + $0x48] sm:$0xff]  ;;  %v864_v7 = vpack.c.bf16 %v90_v4, %v86_v2  ;;  %v94_v9 = vld [vmem:[#allocation5 + $0x40] sm:$0xff]  ;;  %v1402_v33 = vshrl.u32 %v216_v26, 7  ;;  %v1406_v46 = vld.sshfl [vmem:[#allocation2 + $0x8] sm:$0xff pattern:$0x76325410] }
  0x51   :  { %v99_v6 = vld [vmem:[#allocation5 + $0x68] sm:$0xff]  ;;  %v98_v10 = vld [vmem:[#allocation5 + $0x60] sm:$0xff]  ;;  %v1410_v53 = vcombine.high %v1404_v45, %v1406_v46 }
  0x52   :  { %v866_v8 = vpack.c.bf16 %v99_v6, %v95_v5  ;;  %v103_v11 = vld [vmem:[#allocation5 + $0x88] sm:$0xff]  ;;  %863 = vmatprep.subr.bf16.mxu1 %v862_v3  ;;  %v868_v13 = vpack.c.bf16 %v98_v10, %v94_v9  ;;  %v102_v15 = vld [vmem:[#allocation5 + $0x80] sm:$0xff] }
  0x53   :  { %v107_v12 = vld [vmem:[#allocation5 + $0xa8] sm:$0xff]  ;;  %865 = vmatpush1.bf16.msra.mxu1 %v864_v7  ;;  %v106_v16 = vld [vmem:[#allocation5 + $0xa0] sm:$0xff]  ;;  %324 = vmatprep.mubr.f32.mxu1 %v1410_v53 }
  0x54   :  { %867 = vmatprep.subr.bf16.mxu1 %v866_v8  ;;  %v870_v14 = vpack.c.bf16 %v107_v12, %v103_v11  ;;  %v111_v17 = vld [vmem:[#allocation5 + $0xc8] sm:$0xff]  ;;  %v872_v19 = vpack.c.bf16 %v106_v16, %v102_v15  ;;  %v110_v21 = vld [vmem:[#allocation5 + $0xc0] sm:$0xff] }
  0x55   :  { %v115_v18 = vld [vmem:[#allocation5 + $0xe8] sm:$0xff]  ;;  %v114_v22 = vld [vmem:[#allocation5 + $0xe0] sm:$0xff] }
  0x56   :  { %v874_v20 = vpack.c.bf16 %v115_v18, %v111_v17  ;;  %v119_v23 = vld [vmem:[#allocation5 + $0x108] sm:$0xff]  ;;  %v876_v25 = vpack.c.bf16 %v114_v22, %v110_v21  ;;  %v118_v28 = vld [vmem:[#allocation5 + $0x100] sm:$0xff]  ;;  %v409_v21 = vld [vmem:[#allocation7 + $0x18] sm:$0xff] }
  0x57   :  { %869 = vmatpush1.bf16.msra.mxu1 %v868_v13  ;;  %v123_v24 = vld [vmem:[#allocation5 + $0x128] sm:$0xff]  ;;  %v122_v29 = vld [vmem:[#allocation5 + $0x120] sm:$0xff] }
  0x58   :  { %871 = vmatprep.subr.bf16.mxu1 %v870_v14  ;;  %v878_v27 = vpack.c.bf16 %v123_v24, %v119_v23  ;;  %v127_v30 = vld [vmem:[#allocation5 + $0x148] sm:$0xff]  ;;  %v880_v32 = vpack.c.bf16 %v122_v29, %v118_v28  ;;  %v126_v35 = vld [vmem:[#allocation5 + $0x140] sm:$0xff]  ;;  %v408_v23 = vld [vmem:[#allocation7 + $0x10] sm:$0xff] }
  0x59   :  { %v131_v31 = vld [vmem:[#allocation5 + $0x168] sm:$0xff]  ;;  %v130_v36 = vld [vmem:[#allocation5 + $0x160] sm:$0xff] }
  0x5a   :  { %v882_v34 = vpack.c.bf16 %v131_v31, %v127_v30  ;;  %v135_v37 = vld [vmem:[#allocation5 + $0x188] sm:$0xff]  ;;  %v884_v39 = vpack.c.bf16 %v130_v36, %v126_v35  ;;  %v134_v40 = vld [vmem:[#allocation5 + $0x180] sm:$0xff]  ;;  %v412_v30 = vld [vmem:[#allocation7 + $0x30] sm:$0xff] }
  0x5b   :  { %873 = vmatpush1.bf16.msra.mxu1 %v872_v19  ;;  %v139_v38 = vld [vmem:[#allocation5 + $0x1a8] sm:$0xff]  ;;  %v138_v41 = vld [vmem:[#allocation5 + $0x1a0] sm:$0xff] }
  0x5c   :  { %875 = vmatprep.subr.bf16.mxu1 %v874_v20  ;;  %v143_v42 = vld [vmem:[#allocation5 + $0x1c8] sm:$0xff]  ;;  %v886_v43 = vpack.c.bf16 %v139_v38, %v135_v37  ;;  %v888_v47 = vpack.c.bf16 %v138_v41, %v134_v40  ;;  %v142_v49 = vld [vmem:[#allocation5 + $0x1c0] sm:$0xff] }
  0x5d   :  { %v147_v44 = vld [vmem:[#allocation5 + $0x1e8] sm:$0xff]  ;;  %v146_v50 = vld [vmem:[#allocation5 + $0x1e0] sm:$0xff] }
  0x5e   :  { %v890_v48 = vpack.c.bf16 %v147_v44, %v143_v42  ;;  %v151_v51 = vld [vmem:[#allocation5 + $0x208] sm:$0xff]  ;;  %v892_v54 = vpack.c.bf16 %v146_v50, %v142_v49  ;;  %v150_v56 = vld [vmem:[#allocation5 + $0x200] sm:$0xff] }
  0x5f   :  { %877 = vmatpush1.bf16.msra.mxu1 %v876_v25  ;;  %v155_v52 = vld [vmem:[#allocation5 + $0x228] sm:$0xff]  ;;  %v154_v57 = vld [vmem:[#allocation5 + $0x220] sm:$0xff] }
  0x60   :  { %879 = vmatprep.subr.bf16.mxu1 %v878_v27  ;;  %v894_v55 = vpack.c.bf16 %v155_v52, %v151_v51  ;;  %v159_v58 = vld [vmem:[#allocation5 + $0x248] sm:$0xff]  ;;  %v896_v60 = vpack.c.bf16 %v154_v57, %v150_v56  ;;  %v158_v62 = vld [vmem:[#allocation5 + $0x240] sm:$0xff]  ;;  %v413_v27 = vld [vmem:[#allocation7 + $0x38] sm:$0xff] }
  0x61   :  { %v163_v59 = vld [vmem:[#allocation5 + $0x268] sm:$0xff]  ;;  %v162_v63 = vld [vmem:[#allocation5 + $0x260] sm:$0xff] }
  0x62   :  { %v898_v61 = vpack.c.bf16 %v163_v59, %v159_v58  ;;  %v167_v0 = vld [vmem:[#allocation5 + $0x288] sm:$0xff]  ;;  %v900_v2 = vpack.c.bf16 %v162_v63, %v158_v62  ;;  %v166_v4 = vld [vmem:[#allocation5 + $0x280] sm:$0xff]  ;;  %v420_v58 = vld [vmem:[#allocation7 + $0x70] sm:$0xff] }
  0x63   :  { %881 = vmatpush1.bf16.msra.mxu1 %v880_v32  ;;  %v171_v1 = vld [vmem:[#allocation5 + $0x2a8] sm:$0xff]  ;;  %v170_v5 = vld [vmem:[#allocation5 + $0x2a0] sm:$0xff]  ;;  %v417_v32 = vld [vmem:[#allocation7 + $0x58] sm:$0xff] }
  0x64   :  { %883 = vmatprep.subr.bf16.mxu1 %v882_v34  ;;  %v902_v3 = vpack.c.bf16 %v171_v1, %v167_v0  ;;  %v175_v6 = vld [vmem:[#allocation5 + $0x2c8] sm:$0xff]  ;;  %v904_v8 = vpack.c.bf16 %v170_v5, %v166_v4  ;;  %v174_v10 = vld [vmem:[#allocation5 + $0x2c0] sm:$0xff]  ;;  %v89_v1 = vld [vmem:[#allocation5 + $0x18] sm:$0xff] }
  0x65   :  { %v179_v7 = vld [vmem:[#allocation5 + $0x2e8] sm:$0xff]  ;;  %v178_v11 = vld [vmem:[#allocation5 + $0x2e0] sm:$0xff] }
  0x66   :  { %v906_v9 = vpack.c.bf16 %v179_v7, %v175_v6  ;;  %v183_v12 = vld [vmem:[#allocation5 + $0x308] sm:$0xff]  ;;  %v182_v14 = vld [vmem:[#allocation5 + $0x300] sm:$0xff]  ;;  %v908_v16 = vpack.c.bf16 %v178_v11, %v174_v10  ;;  %v424_v6 = vld [vmem:[#allocation7 + $0x90] sm:$0xff] }
  0x67   :  { %885 = vmatpush1.bf16.msra.mxu1 %v884_v39  ;;  %v187_v13 = vld [vmem:[#allocation5 + $0x328] sm:$0xff]  ;;  %v186_v15 = vld [vmem:[#allocation5 + $0x320] sm:$0xff]  ;;  %v88_v11 = vld [vmem:[#allocation5 + $0x10] sm:$0xff] }
  0x68   :  { %887 = vmatprep.subr.bf16.mxu1 %v886_v43  ;;  %v191_v17 = vld [vmem:[#allocation5 + $0x348] sm:$0xff]  ;;  %v910_v20 = vpack.c.bf16 %v187_v13, %v183_v12  ;;  %v406_v22 = vld [vmem:[#allocation7] sm:$0xff]  ;;  %v912_v34 = vpack.c.bf16 %v186_v15, %v182_v14  ;;  %v416_v43 = vld [vmem:[#allocation7 + $0x50] sm:$0xff] }
  0x69   :  { %v195_v18 = vld [vmem:[#allocation5 + $0x368] sm:$0xff]  ;;  %v992_v25 = vpack.c.bf16 %v408_v23, %v406_v22  ;;  %v410_v28 = vld [vmem:[#allocation7 + $0x20] sm:$0xff]  ;;  %v92_v12 = vld [vmem:[#allocation5 + $0x30] sm:$0xff] }
  0x6a   :  { %v407_v19 = vld [vmem:[#allocation7 + $0x8] sm:$0xff]  ;;  %v914_v35 = vpack.c.bf16 %v195_v18, %v191_v17  ;;  %v190_v36 = vld [vmem:[#allocation5 + $0x340] sm:$0xff]  ;;  %v996_v39 = vpack.c.bf16 %v412_v30, %v410_v28  ;;  %v97_v13 = vld [vmem:[#allocation5 + $0x58] sm:$0xff]  ;;  %v928_v22 = vpack.c.bf16 %v92_v12, %v88_v11 }
  0x6b   :  { %889 = vmatpush1.bf16.msra.mxu1 %v888_v47  ;;  %v990_v24 = vpack.c.bf16 %v409_v21, %v407_v19  ;;  %v411_v26 = vld [vmem:[#allocation7 + $0x28] sm:$0xff]  ;;  %v194_v37 = vld [vmem:[#allocation5 + $0x360] sm:$0xff]  ;;  %v421_v47 = vld [vmem:[#allocation7 + $0x78] sm:$0xff]  ;;  %v1415_v19 = vcombine.low %v1404_v45, %v1406_v46 }
  0x6c   :  { %891 = vmatprep.subr.bf16.mxu1 %v890_v48  ;;  %v994_v29 = vpack.c.bf16 %v413_v27, %v411_v26  ;;  %v415_v31 = vld [vmem:[#allocation7 + $0x48] sm:$0xff]  ;;  %v414_v42 = vld [vmem:[#allocation7 + $0x40] sm:$0xff]  ;;  %v916_v48 = vpack.c.bf16 %v194_v37, %v190_v36  ;;  %v101_v15 = vld [vmem:[#allocation5 + $0x78] sm:$0xff] }
  0x6d   :  { %991 = vmatprep.subr.bf16.mxu0 %v990_v24  ;;  %v199_v38 = vld [vmem:[#allocation5 + $0x388] sm:$0xff]  ;;  %v998_v41 = vpack.c.bf16 %v417_v32, %v415_v31  ;;  %v198_v50 = vld [vmem:[#allocation5 + $0x380] sm:$0xff]  ;;  %v428_v18 = vld [vmem:[#allocation7 + $0xb0] sm:$0xff]  ;;  %v930_v23 = vpack.c.bf16 %v101_v15, %v97_v13 }
  0x6e   :  { %993 = vmatpush1.bf16.msra.mxu0 %v992_v25  ;;  %v203_v40 = vld [vmem:[#allocation5 + $0x3a8] sm:$0xff]  ;;  %v202_v51 = vld [vmem:[#allocation5 + $0x3a0] sm:$0xff]  ;;  %v433_v21 = vld [vmem:[#allocation7 + $0xd8] sm:$0xff] }
  0x6f   :  { %893 = vmatpush1.bf16.msra.mxu1 %v892_v54  ;;  %995 = vmatprep.subr.bf16.mxu0 %v994_v29  ;;  %v419_v44 = vld [vmem:[#allocation7 + $0x68] sm:$0xff]  ;;  %v918_v49 = vpack.c.bf16 %v203_v40, %v199_v38  ;;  %v1000_v54 = vpack.c.bf16 %v416_v43, %v414_v42  ;;  %v418_v57 = vld [vmem:[#allocation7 + $0x60] sm:$0xff]  ;;  %v96_v24 = vld [vmem:[#allocation5 + $0x50] sm:$0xff] }
  0x70   :  { %895 = vmatprep.subr.bf16.mxu1 %v894_v55  ;;  %v207_v52 = vld [vmem:[#allocation5 + $0x3c8] sm:$0xff]  ;;  %v1002_v56 = vpack.c.bf16 %v421_v47, %v419_v44  ;;  %v206_v63 = vld [vmem:[#allocation5 + $0x3c0] sm:$0xff]  ;;  %v100_v25 = vld [vmem:[#allocation5 + $0x70] sm:$0xff] }
  0x71   :  { %v211_v55 = vld [vmem:[#allocation5 + $0x3e8] sm:$0xff]  ;;  %v210_v0 = vld [vmem:[#allocation5 + $0x3e0] sm:$0xff]  ;;  %v105_v26 = vld [vmem:[#allocation5 + $0x98] sm:$0xff]  ;;  %v932_v32 = vpack.c.bf16 %v100_v25, %v96_v24 }
  0x72   :  { %997 = vmatpush1.bf16.msra.mxu0 %v996_v39  ;;  %v423_v59 = vld [vmem:[#allocation7 + $0x88] sm:$0xff]  ;;  %v922_v62 = vpack.c.bf16 %v211_v55, %v207_v52  ;;  %v422_v5 = vld [vmem:[#allocation7 + $0x80] sm:$0xff]  ;;  %v109_v28 = vld [vmem:[#allocation5 + $0xb8] sm:$0xff] }
  0x73   :  { %897 = vmatpush1.bf16.msra.mxu1 %v896_v60  ;;  %999 = vmatprep.subr.bf16.mxu0 %v998_v41  ;;  %v425_v60 = vld [vmem:[#allocation7 + $0x98] sm:$0xff]  ;;  %v427_v7 = vld [vmem:[#allocation7 + $0xa8] sm:$0xff]  ;;  %v1008_v14 = vpack.c.bf16 %v424_v6, %v422_v5  ;;  %v426_v17 = vld [vmem:[#allocation7 + $0xa0] sm:$0xff] }
  0x74   :  { %899 = vmatprep.subr.bf16.mxu1 %v898_v61  ;;  %v920_v61 = vpack.c.bf16 %v202_v51, %v198_v50  ;;  %v1006_v4 = vpack.c.bf16 %v425_v60, %v423_v59  ;;  %v1012_v27 = vpack.c.bf16 %v428_v18, %v426_v17  ;;  %v430_v30 = vld [vmem:[#allocation7 + $0xc0] sm:$0xff]  ;;  %v432_v31 = vld [vmem:[#allocation7 + $0xd0] sm:$0xff]  ;;  %v435_v45 = vld [vmem:[#allocation7 + $0xe8] sm:$0xff] }
  0x75   :  { %v437_v46 = vld [vmem:[#allocation7 + $0xf8] sm:$0xff]  ;;  %v108_v36 = vld [vmem:[#allocation5 + $0xb0] sm:$0xff]  ;;  %v1016_v38 = vpack.c.bf16 %v432_v31, %v430_v30  ;;  %v434_v41 = vld [vmem:[#allocation7 + $0xe0] sm:$0xff] }
  0x76   :  { %1001 = vmatpush1.bf16.msra.mxu0 %v1000_v54  ;;  %v113_v37 = vld [vmem:[#allocation5 + $0xd8] sm:$0xff]  ;;  %v1018_v40 = vpack.c.bf16 %v437_v46, %v435_v45  ;;  %v436_v42 = vld [vmem:[#allocation7 + $0xf0] sm:$0xff]  ;;  %v439_v43 = vld [vmem:[#allocation7 + $0x108] sm:$0xff] }
  0x77   :  { %901 = vmatpush1.bf16.msra.mxu1 %v900_v2  ;;  %v1004_v2 = vpack.c.bf16 %v420_v58, %v418_v57  ;;  %1003 = vmatprep.subr.bf16.mxu0 %v1002_v56  ;;  %v117_v39 = vld [vmem:[#allocation5 + $0xf8] sm:$0xff]  ;;  %v1020_v51 = vpack.c.bf16 %v436_v42, %v434_v41  ;;  %v438_v55 = vld [vmem:[#allocation7 + $0x100] sm:$0xff]  ;;  %v440_v56 = vld [vmem:[#allocation7 + $0x110] sm:$0xff] }
  0x78   :  { %903 = vmatprep.subr.bf16.mxu1 %v902_v3  ;;  %v93_v3 = vld [vmem:[#allocation5 + $0x38] sm:$0xff]  ;;  %v443_v57 = vld [vmem:[#allocation7 + $0x128] sm:$0xff]  ;;  %v446_v15 = vld [vmem:[#allocation7 + $0x140] sm:$0xff] }
  0x79   :  { %v926_v10 = vpack.c.bf16 %v93_v3, %v89_v1  ;;  %v441_v44 = vld [vmem:[#allocation7 + $0x118] sm:$0xff]  ;;  %v442_v3 = vld [vmem:[#allocation7 + $0x120] sm:$0xff]  ;;  %v447_v5 = vld [vmem:[#allocation7 + $0x148] sm:$0xff] }
  0x7a   :  { %1005 = vmatpush1.bf16.msra.mxu0 %v1004_v2  ;;  %v121_v50 = vld [vmem:[#allocation5 + $0x118] sm:$0xff]  ;;  %v1022_v54 = vpack.c.bf16 %v441_v44, %v439_v43  ;;  %v451_v17 = vld [vmem:[#allocation7 + $0x168] sm:$0xff] }
  0x7b   :  { %905 = vmatpush1.bf16.msra.mxu1 %v904_v8  ;;  %v429_v8 = vld [vmem:[#allocation7 + $0xb8] sm:$0xff]  ;;  %1007 = vmatprep.subr.bf16.mxu0 %v1006_v4  ;;  %v444_v4 = vld [vmem:[#allocation7 + $0x130] sm:$0xff]  ;;  %v455_v30 = vld [vmem:[#allocation7 + $0x188] sm:$0xff] }
  0x7c   :  { %907 = vmatprep.subr.bf16.mxu1 %v906_v9  ;;  %v924_v9 = vpack.c.bf16 %v210_v0, %v206_v63  ;;  %v125_v52 = vld [vmem:[#allocation5 + $0x138] sm:$0xff]  ;;  %v1024_v0 = vpack.c.bf16 %v440_v56, %v438_v55  ;;  %v1028_v12 = vpack.c.bf16 %v444_v4, %v442_v3  ;;  %v459_v41 = vld [vmem:[#allocation7 + $0x1a8] sm:$0xff]  ;;  %v168_v3 = vld [vmem:[#allocation5 + $0x290] sm:$0xff] }
  0x7d   :  { %v445_v58 = vld [vmem:[#allocation7 + $0x138] sm:$0xff]  ;;  %v942_v60 = vpack.c.bf16 %v125_v52, %v121_v50  ;;  %v458_v52 = vld [vmem:[#allocation7 + $0x1a0] sm:$0xff]  ;;  %v463_v55 = vld [vmem:[#allocation7 + $0x1c8] sm:$0xff] }
  0x7e   :  { %1009 = vmatpush1.bf16.msra.mxu0 %v1008_v14  ;;  %v129_v63 = vld [vmem:[#allocation5 + $0x158] sm:$0xff]  ;;  %v1026_v2 = vpack.c.bf16 %v445_v58, %v443_v57  ;;  %v172_v4 = vld [vmem:[#allocation5 + $0x2b0] sm:$0xff] }
  0x7f   :  { %909 = vmatpush1.bf16.msra.mxu1 %v908_v16  ;;  %v1010_v16 = vpack.c.bf16 %v429_v8, %v427_v7  ;;  %v133_v1 = vld [vmem:[#allocation5 + $0x178] sm:$0xff] }
  0x80   :  { %911 = vmatprep.subr.bf16.mxu1 %v910_v20  ;;  %v431_v20 = vld [vmem:[#allocation7 + $0xc8] sm:$0xff]  ;;  %v449_v6 = vld [vmem:[#allocation7 + $0x158] sm:$0xff]  ;;  %v946_v8 = vpack.c.bf16 %v133_v1, %v129_v63 }
  0x81   :  { %1011 = vmatprep.subr.bf16.mxu0 %v1010_v16  ;;  %v1014_v29 = vpack.c.bf16 %v433_v21, %v431_v20  ;;  %v137_v11 = vld [vmem:[#allocation5 + $0x198] sm:$0xff]  ;;  %v1030_v14 = vpack.c.bf16 %v449_v6, %v447_v5  ;;  %v448_v16 = vld [vmem:[#allocation7 + $0x150] sm:$0xff] }
  0x82   :  { %1013 = vmatpush1.bf16.msra.mxu0 %v1012_v27  ;;  %v141_v13 = vld [vmem:[#allocation5 + $0x1b8] sm:$0xff]  ;;  %v1032_v25 = vpack.c.bf16 %v448_v16, %v446_v15  ;;  %v184_v15 = vld [vmem:[#allocation5 + $0x310] sm:$0xff] }
  0x83   :  { %913 = vmatpush1.bf16.msra.mxu1 %v912_v34  ;;  %v934_v34 = vpack.c.bf16 %v109_v28, %v105_v26  ;;  %1015 = vmatprep.subr.bf16.mxu0 %v1014_v29  ;;  %v453_v18 = vld [vmem:[#allocation7 + $0x178] sm:$0xff]  ;;  %v950_v21 = vpack.c.bf16 %v141_v13, %v137_v11  ;;  %v450_v28 = vld [vmem:[#allocation7 + $0x160] sm:$0xff]  ;;  %v452_v29 = vld [vmem:[#allocation7 + $0x170] sm:$0xff] }
  0x84   :  { %915 = vmatprep.subr.bf16.mxu1 %v914_v35  ;;  %v104_v35 = vld [vmem:[#allocation5 + $0x90] sm:$0xff]  ;;  %v145_v24 = vld [vmem:[#allocation5 + $0x1d8] sm:$0xff]  ;;  %v1034_v27 = vpack.c.bf16 %v453_v18, %v451_v17 }
  0x85   :  { %v936_v47 = vpack.c.bf16 %v108_v36, %v104_v35  ;;  %v149_v26 = vld [vmem:[#allocation5 + $0x1f8] sm:$0xff]  ;;  %v1036_v36 = vpack.c.bf16 %v452_v29, %v450_v28  ;;  %v188_v16 = vld [vmem:[#allocation5 + $0x330] sm:$0xff] }
  0x86   :  { %1017 = vmatpush1.bf16.msra.mxu0 %v1016_v38  ;;  %v457_v31 = vld [vmem:[#allocation7 + $0x198] sm:$0xff]  ;;  %v954_v46 = vpack.c.bf16 %v149_v26, %v145_v24  ;;  %v200_v28 = vld [vmem:[#allocation5 + $0x390] sm:$0xff] }
  0x87   :  { %917 = vmatpush1.bf16.msra.mxu1 %v916_v48  ;;  %v938_v48 = vpack.c.bf16 %v117_v39, %v113_v37  ;;  %1019 = vmatprep.subr.bf16.mxu0 %v1018_v40  ;;  %v153_v35 = vld [vmem:[#allocation5 + $0x218] sm:$0xff]  ;;  %v1038_v38 = vpack.c.bf16 %v457_v31, %v455_v30  ;;  %v454_v39 = vld [vmem:[#allocation7 + $0x180] sm:$0xff]  ;;  %v456_v40 = vld [vmem:[#allocation7 + $0x190] sm:$0xff] }
  0x88   :  { %919 = vmatprep.subr.bf16.mxu1 %v918_v49  ;;  %v112_v49 = vld [vmem:[#allocation5 + $0xd0] sm:$0xff]  ;;  %v157_v37 = vld [vmem:[#allocation5 + $0x238] sm:$0xff] }
  0x89   :  { %v461_v42 = vld [vmem:[#allocation7 + $0x1b8] sm:$0xff]  ;;  %v958_v44 = vpack.c.bf16 %v157_v37, %v153_v35  ;;  %v204_v29 = vld [vmem:[#allocation5 + $0x3b0] sm:$0xff] }
  0x8a   :  { %1021 = vmatpush1.bf16.msra.mxu0 %v1020_v51  ;;  %v165_v50 = vld [vmem:[#allocation5 + $0x278] sm:$0xff]  ;;  %v1042_v51 = vpack.c.bf16 %v461_v42, %v459_v41  ;;  %v464_v37 = vld [vmem:[#allocation7 + $0x1d0] sm:$0xff]  ;;  %v466_v42 = vld [vmem:[#allocation7 + $0x1e0] sm:$0xff] }
  0x8b   :  { %921 = vmatpush1.bf16.msra.mxu1 %v920_v61  ;;  %v120_v61 = vld [vmem:[#allocation5 + $0x110] sm:$0xff]  ;;  %1023 = vmatprep.subr.bf16.mxu0 %v1022_v54  ;;  %v465_v56 = vld [vmem:[#allocation7 + $0x1d8] sm:$0xff] }
  0x8c   :  { %923 = vmatprep.subr.bf16.mxu1 %v922_v62  ;;  %v124_v62 = vld [vmem:[#allocation5 + $0x130] sm:$0xff]  ;;  %v173_v63 = vld [vmem:[#allocation5 + $0x2b8] sm:$0xff] }
  0x8d   :  { %v944_v7 = vpack.c.bf16 %v124_v62, %v120_v61  ;;  %v460_v54 = vld [vmem:[#allocation7 + $0x1b0] sm:$0xff]  ;;  %v169_v62 = vld [vmem:[#allocation5 + $0x298] sm:$0xff] }
  0x8e   :  { %1025 = vmatpush1.bf16.msra.mxu0 %v1024_v0  ;;  %v1044_v61 = vpack.c.bf16 %v460_v54, %v458_v52  ;;  %v1046_v0 = vpack.c.bf16 %v465_v56, %v463_v55  ;;  %v177_v5 = vld [vmem:[#allocation5 + $0x2d8] sm:$0xff]  ;;  %v691_v52 = vld [vmem:[#allocation8 + $0x8] sm:$0xff]  ;;  %v708_v54 = vld [vmem:[#allocation8 + $0x90] sm:$0xff] }
  0x8f   :  { %925 = vmatpush1.bf16.msra.mxu1 %v924_v9  ;;  %v128_v9 = vld [vmem:[#allocation5 + $0x150] sm:$0xff]  ;;  %1027 = vmatprep.subr.bf16.mxu0 %v1026_v2  ;;  %v966_v2 = vpack.c.bf16 %v173_v63, %v169_v62  ;;  %v181_v6 = vld [vmem:[#allocation5 + $0x2f8] sm:$0xff] }
  0x90   :  { %927 = vmatprep.subr.bf16.mxu1 %v926_v10  ;;  %v132_v10 = vld [vmem:[#allocation5 + $0x170] sm:$0xff]  ;;  %v185_v11 = vld [vmem:[#allocation5 + $0x318] sm:$0xff] }
  0x91   :  { %v948_v20 = vpack.c.bf16 %v132_v10, %v128_v9  ;;  %v176_v9 = vld [vmem:[#allocation5 + $0x2d0] sm:$0xff]  ;;  %v193_v17 = vld [vmem:[#allocation5 + $0x358] sm:$0xff] }
  0x92   :  { %325 = vmatmul.mubr.f32.vlgmr.msra.gmra.mrb[0].mxu1 %v1415_v19  ;;  %1029 = vmatpush1.bf16.msra.mxu0 %v1028_v12  ;;  %v180_v10 = vld [vmem:[#allocation5 + $0x2f0] sm:$0xff]  ;;  %v189_v12 = vld [vmem:[#allocation5 + $0x338] sm:$0xff] }
  0x93   :  { %929 = vmatpush1.bf16.msra.mxu1 %v928_v22  ;;  %395 = vmatprep.mubr.f32.mxu1 %v1410_v53  ;;  %v116_v53 = vld [vmem:[#allocation5 + $0xf0] sm:$0xff]  ;;  %v972_v13 = vpack.c.bf16 %v180_v10, %v176_v9  ;;  %v197_v18 = vld [vmem:[#allocation5 + $0x378] sm:$0xff]  ;;  %v218_v9 = vsub.s32 0, %v1402_v33 }
  0x94   :  { %931 = vmatprep.subr.bf16.mxu1 %v930_v23  ;;  %v940_v59 = vpack.c.bf16 %v116_v53, %v112_v49  ;;  %v136_v22 = vld [vmem:[#allocation5 + $0x190] sm:$0xff]  ;;  %1031 = vmatprep.subr.bf16.mxu0 %v1030_v14  ;;  %v161_v49 = vld [vmem:[#allocation5 + $0x258] sm:$0xff]  ;;  %v1040_v53 = vpack.c.bf16 %v456_v40, %v454_v39  ;;  %v974_v14 = vpack.c.bf16 %v189_v12, %v185_v11  ;;  %v467_v39 = vld [vmem:[#allocation7 + $0x1e8] sm:$0xff]  ;;  %v222_v11 = vsub.s32 1, %v1402_v33 }
  0x95   :  { %v140_v23 = vld [vmem:[#allocation5 + $0x1b0] sm:$0xff]  ;;  %v962_v58 = vpack.c.bf16 %v165_v50, %v161_v49  ;;  %v201_v24 = vld [vmem:[#allocation5 + $0x398] sm:$0xff]  ;;  %v707_v50 = vld [vmem:[#allocation8 + $0x88] sm:$0xff] }
  0x96   :  { %v952_v45 = vpack.c.bf16 %v140_v23, %v136_v22  ;;  %1033 = vmatpush1.bf16.msra.mxu0 %v1032_v25  ;;  %v192_v22 = vld [vmem:[#allocation5 + $0x350] sm:$0xff]  ;;  %v205_v25 = vld [vmem:[#allocation5 + $0x3b8] sm:$0xff] }
  0x97   :  { %933 = vmatpush1.bf16.msra.mxu1 %v932_v32  ;;  %v144_v32 = vld [vmem:[#allocation5 + $0x1d0] sm:$0xff]  ;;  %1035 = vmatprep.subr.bf16.mxu0 %v1034_v27  ;;  %v982_v27 = vpack.c.bf16 %v205_v25, %v201_v24  ;;  %v209_v30 = vld [vmem:[#allocation5 + $0x3d8] sm:$0xff] }
  0x98   :  { %935 = vmatprep.subr.bf16.mxu1 %v934_v34  ;;  %v148_v34 = vld [vmem:[#allocation5 + $0x1f0] sm:$0xff]  ;;  %v213_v31 = vld [vmem:[#allocation5 + $0x3f8] sm:$0xff] }
  0x99   :  { %v956_v43 = vpack.c.bf16 %v148_v34, %v144_v32  ;;  %v196_v23 = vld [vmem:[#allocation5 + $0x370] sm:$0xff]  ;;  %v469_v40 = vld [vmem:[#allocation7 + $0x1f8] sm:$0xff] }
  0x9a   :  { %1037 = vmatpush1.bf16.msra.mxu0 %v1036_v36  ;;  %v980_v26 = vpack.c.bf16 %v196_v23, %v192_v22  ;;  %v208_v32 = vld [vmem:[#allocation5 + $0x3d0] sm:$0xff]  ;;  %v462_v36 = vld [vmem:[#allocation7 + $0x1c0] sm:$0xff]  ;;  %v1050_v41 = vpack.c.bf16 %v469_v40, %v467_v39  ;;  %v709_v55 = vld [vmem:[#allocation8 + $0x98] sm:$0xff] }
  0x9b   :  { %937 = vmatpush1.bf16.msra.mxu1 %v936_v47  ;;  %v152_v47 = vld [vmem:[#allocation5 + $0x210] sm:$0xff]  ;;  %1039 = vmatprep.subr.bf16.mxu0 %v1038_v38  ;;  %v1048_v38 = vpack.c.bf16 %v464_v37, %v462_v36  ;;  %v477_v22 = vld [vmem:[#allocation7 + $0x238] sm:$0xff]  ;;  %v487_v40 = vld [vmem:[#allocation7 + $0x288] sm:$0xff] }
  0x9c   :  { %939 = vmatprep.subr.bf16.mxu1 %v938_v48  ;;  %v156_v48 = vld [vmem:[#allocation5 + $0x230] sm:$0xff] }
  0x9d   :  { %v960_v57 = vpack.c.bf16 %v156_v48, %v152_v47  ;;  %v212_v34 = vld [vmem:[#allocation5 + $0x3f0] sm:$0xff]  ;;  %v471_v47 = vld [vmem:[#allocation7 + $0x208] sm:$0xff]  ;;  %v473_v48 = vld [vmem:[#allocation7 + $0x218] sm:$0xff] }
  0x9e   :  { %1041 = vmatpush1.bf16.msra.mxu0 %v1040_v53  ;;  %v988_v35 = vpack.c.bf16 %v212_v34, %v208_v32  ;;  %v1054_v49 = vpack.c.bf16 %v473_v48, %v471_v47  ;;  %v706_v53 = vld [vmem:[#allocation8 + $0x80] sm:$0xff]  ;;  %v1424_v10 = vld [vmem:[%s1463_s2] sm:$0xf]  ;;  %v483_v34 = vld [vmem:[#allocation7 + $0x268] sm:$0xff] }
  0x9f   :  { %941 = vmatpush1.bf16.msra.mxu1 %v940_v59  ;;  %v160_v59 = vld [vmem:[#allocation5 + $0x250] sm:$0xff]  ;;  %1043 = vmatprep.subr.bf16.mxu0 %v1042_v51  ;;  %v690_v51 = vld [vmem:[#allocation8] sm:$0xff]  ;;  %v219_v12 = vrot.slane %v1424_v10, %v218_v9  ;;  %v491_v48 = vld [vmem:[#allocation7 + $0x2a8] sm:$0xff] }
  0xa0   :  { %943 = vmatprep.subr.bf16.mxu1 %v942_v60  ;;  %v164_v60 = vld [vmem:[#allocation5 + $0x270] sm:$0xff]  ;;  %v1120_v56 = vpack.c.bf16 %v691_v52, %v690_v51  ;;  %v490_v51 = vld [vmem:[#allocation7 + $0x2a0] sm:$0xff]  ;;  %v495_v52 = vld [vmem:[#allocation7 + $0x2c8] sm:$0xff] }
  0xa1   :  { %v964_v1 = vpack.c.bf16 %v164_v60, %v160_v59  ;;  %v693_v59 = vld [vmem:[#allocation8 + $0x18] sm:$0xff]  ;;  %v710_v60 = vld [vmem:[#allocation8 + $0xa0] sm:$0xff]  ;;  %v480_v32 = vld [vmem:[#allocation7 + $0x250] sm:$0xff] }
  0xa2   :  { %1045 = vmatpush1.bf16.msra.mxu0 %v1044_v61  ;;  %v711_v61 = vld [vmem:[#allocation8 + $0xa8] sm:$0xff]  ;;  %v484_v39 = vld [vmem:[#allocation7 + $0x270] sm:$0xff] }
  0xa3   :  { %945 = vmatpush1.bf16.msra.mxu1 %v944_v7  ;;  %1047 = vmatprep.subr.bf16.mxu0 %v1046_v0  ;;  %v968_v7 = vpack.c.bf16 %v172_v4, %v168_v3  ;;  %v1126_v63 = vpack.c.bf16 %v711_v61, %v710_v60  ;;  %v694_v0 = vld [vmem:[#allocation8 + $0x20] sm:$0xff]  ;;  %v713_v3 = vld [vmem:[#allocation8 + $0xb8] sm:$0xff]  ;;  %v488_v47 = vld [vmem:[#allocation7 + $0x290] sm:$0xff] }
  0xa4   :  { %947 = vmatprep.subr.bf16.mxu1 %v946_v8  ;;  %v970_v8 = vpack.c.bf16 %v181_v6, %v177_v5  ;;  %v696_v6 = vld [vmem:[#allocation8 + $0x30] sm:$0xff]  ;;  %v501_v60 = vld [vmem:[#allocation7 + $0x2f8] sm:$0xff] }
  0xa6   :  { %1049 = vmatpush1.bf16.msra.mxu0 %v1048_v38  ;;  %v482_v38 = vld [vmem:[#allocation7 + $0x260] sm:$0xff] }
  0xa7   :  { %949 = vmatpush1.bf16.msra.mxu1 %v948_v20  ;;  %v976_v20 = vpack.c.bf16 %v188_v16, %v184_v15  ;;  %1051 = vmatprep.subr.bf16.mxu0 %v1050_v41  ;;  %v489_v41 = vld [vmem:[#allocation7 + $0x298] sm:$0xff] }
  0xa8   :  { %951 = vmatprep.subr.bf16.mxu1 %v950_v21  ;;  %v978_v21 = vpack.c.bf16 %v197_v18, %v193_v17  ;;  %v470_v17 = vld [vmem:[#allocation7 + $0x200] sm:$0xff]  ;;  %v472_v18 = vld [vmem:[#allocation7 + $0x210] sm:$0xff] }
  0xa9   :  { %v1056_v25 = vpack.c.bf16 %v472_v18, %v470_v17  ;;  %v513_v17 = vld [vmem:[#allocation7 + $0x358] sm:$0xff] }
  0xab   :  { %953 = vmatpush1.bf16.msra.mxu1 %v952_v45  ;;  %v984_v45 = vpack.c.bf16 %v204_v29, %v200_v28  ;;  %v476_v28 = vld [vmem:[#allocation7 + $0x230] sm:$0xff]  ;;  %v479_v29 = vld [vmem:[#allocation7 + $0x248] sm:$0xff] }
  0xac   :  { %955 = vmatprep.subr.bf16.mxu1 %v954_v46  ;;  %v986_v46 = vpack.c.bf16 %v213_v31, %v209_v30  ;;  %v481_v30 = vld [vmem:[#allocation7 + $0x258] sm:$0xff] }
  0xaf   :  { %957 = vmatpush1.bf16.msra.mxu1 %v956_v43  ;;  %v468_v43 = vld [vmem:[#allocation7 + $0x1f0] sm:$0xff] }
  0xb0   :  { %959 = vmatprep.subr.bf16.mxu1 %v958_v44  ;;  %v1052_v44 = vpack.c.bf16 %v468_v43, %v466_v42  ;;  %v1068_v42 = vpack.c.bf16 %v484_v39, %v482_v38  ;;  %v1070_v43 = vpack.c.bf16 %v489_v41, %v487_v40  ;;  %v522_v38 = vld [vmem:[#allocation7 + $0x3a0] sm:$0xff]  ;;  %v524_v39 = vld [vmem:[#allocation7 + $0x3b0] sm:$0xff]  ;;  %v527_v40 = vld [vmem:[#allocation7 + $0x3c8] sm:$0xff] }
  0xb1   :  { %v529_v41 = vld [vmem:[#allocation7 + $0x3d8] sm:$0xff] }
  0xb2   :  { %1053 = vmatpush1.bf16.msra.mxu0 %v1052_v44  ;;  %v486_v44 = vld [vmem:[#allocation7 + $0x280] sm:$0xff] }
  0xb3   :  { %961 = vmatpush1.bf16.msra.mxu1 %v960_v57  ;;  %1055 = vmatprep.subr.bf16.mxu0 %v1054_v49  ;;  %v1122_v57 = vpack.c.bf16 %v709_v55, %v708_v54  ;;  %v493_v49 = vld [vmem:[#allocation7 + $0x2b8] sm:$0xff] }
  0xb4   :  { %963 = vmatprep.subr.bf16.mxu1 %v962_v58  ;;  %v692_v58 = vld [vmem:[#allocation8 + $0x10] sm:$0xff]  ;;  %v497_v54 = vld [vmem:[#allocation7 + $0x2d8] sm:$0xff] }
  0xb5   :  { %v1124_v62 = vpack.c.bf16 %v693_v59, %v692_v58  ;;  %v496_v58 = vld [vmem:[#allocation7 + $0x2d0] sm:$0xff]  ;;  %v499_v59 = vld [vmem:[#allocation7 + $0x2e8] sm:$0xff] }
  0xb7   :  { %965 = vmatpush1.bf16.msra.mxu1 %v964_v1  ;;  %v695_v1 = vld [vmem:[#allocation8 + $0x28] sm:$0xff] }
  0xb8   :  { %967 = vmatprep.subr.bf16.mxu1 %v966_v2  ;;  %v712_v2 = vld [vmem:[#allocation8 + $0xb0] sm:$0xff]  ;;  %v1128_v4 = vpack.c.bf16 %v695_v1, %v694_v0  ;;  %v503_v1 = vld [vmem:[#allocation7 + $0x308] sm:$0xff] }
  0xb9   :  { %v1130_v5 = vpack.c.bf16 %v713_v3, %v712_v2  ;;  %v500_v0 = vld [vmem:[#allocation7 + $0x2f0] sm:$0xff]  ;;  %v505_v2 = vld [vmem:[#allocation7 + $0x318] sm:$0xff] }
  0xbb   :  { %969 = vmatpush1.bf16.msra.mxu1 %v968_v7  ;;  %v697_v7 = vld [vmem:[#allocation8 + $0x38] sm:$0xff] }
  0xbc   :  { %971 = vmatprep.subr.bf16.mxu1 %v970_v8  ;;  %v1132_v8 = vpack.c.bf16 %v697_v7, %v696_v6  ;;  %v504_v6 = vld [vmem:[#allocation7 + $0x310] sm:$0xff]  ;;  %v507_v7 = vld [vmem:[#allocation7 + $0x328] sm:$0xff] }
  0xbf   :  { %973 = vmatpush1.bf16.msra.mxu1 %v972_v13  ;;  %v223_v13 = vrot.slane %v1424_v10, %v222_v11 }
  0xc0   :  { %975 = vmatprep.subr.bf16.mxu1 %v974_v14 }
  0xc3   :  { %977 = vmatpush1.bf16.msra.mxu1 %v976_v20 }
  0xc4   :  { %979 = vmatprep.subr.bf16.mxu1 %v978_v21  ;;  %v475_v21 = vld [vmem:[#allocation7 + $0x228] sm:$0xff] }
  0xc7   :  { %981 = vmatpush1.bf16.msra.mxu1 %v980_v26  ;;  %v1058_v26 = vpack.c.bf16 %v477_v22, %v475_v21  ;;  %v510_v21 = vld [vmem:[#allocation7 + $0x340] sm:$0xff]  ;;  %v512_v22 = vld [vmem:[#allocation7 + $0x350] sm:$0xff] }
  0xc8   :  { %983 = vmatprep.subr.bf16.mxu1 %v982_v27  ;;  %v474_v27 = vld [vmem:[#allocation7 + $0x220] sm:$0xff] }
  0xc9   :  { %v1060_v31 = vpack.c.bf16 %v476_v28, %v474_v27  ;;  %v514_v27 = vld [vmem:[#allocation7 + $0x360] sm:$0xff]  ;;  %v516_v28 = vld [vmem:[#allocation7 + $0x370] sm:$0xff] }
  0xcb   :  { %985 = vmatpush1.bf16.msra.mxu1 %v984_v45  ;;  %v1062_v45 = vpack.c.bf16 %v481_v30, %v479_v29  ;;  %v519_v29 = vld [vmem:[#allocation7 + $0x388] sm:$0xff]  ;;  %v521_v30 = vld [vmem:[#allocation7 + $0x398] sm:$0xff] }
  0xcc   :  { %987 = vmatprep.subr.bf16.mxu1 %v986_v46  ;;  %v478_v46 = vld [vmem:[#allocation7 + $0x240] sm:$0xff] }
  0xcd   :  { %v1064_v36 = vpack.c.bf16 %v480_v32, %v478_v46  ;;  %v518_v46 = vld [vmem:[#allocation7 + $0x380] sm:$0xff]  ;;  %v520_v32 = vld [vmem:[#allocation7 + $0x390] sm:$0xff] }
  0xcf   :  { %989 = vmatpush1.bf16.msra.mxu1 %v988_v35  ;;  %v485_v35 = vld [vmem:[#allocation7 + $0x278] sm:$0xff] }
  0xd0   :  { %v1066_v37 = vpack.c.bf16 %v485_v35, %v483_v34  ;;  %v523_v34 = vld [vmem:[#allocation7 + $0x3a8] sm:$0xff]  ;;  %v525_v35 = vld [vmem:[#allocation7 + $0x3b8] sm:$0xff] }
  0xd2   :  { %396 = vmatmul.mubr.f32.vlgmr.msra.gmra.mrb[2].mxu1 %v1415_v19  ;;  %v1118_v19 = vpack.c.bf16 %v707_v50, %v706_v53  ;;  %v1072_v53 = vpack.c.bf16 %v488_v47, %v486_v44  ;;  %v1074_v50 = vpack.c.bf16 %v493_v49, %v491_v48  ;;  %v226_v44 = vsub.s32 2, %v1402_v33  ;;  %v526_v47 = vld [vmem:[#allocation7 + $0x3c0] sm:$0xff]  ;;  %v528_v48 = vld [vmem:[#allocation7 + $0x3d0] sm:$0xff] }
  0xd3   :  { %v230_v49 = vsub.s32 3, %v1402_v33 }
  0xd4   :  { %1119 = vmatprep.subr.bf16.mxu1 %v1118_v19  ;;  %v492_v19 = vld [vmem:[#allocation7 + $0x2b0] sm:$0xff] }
  0xd5   :  { %1121 = vmatpush3.bf16.msra.mxu1 %v1120_v56  ;;  %v1076_v55 = vpack.c.bf16 %v492_v19, %v490_v51  ;;  %v1078_v56 = vpack.c.bf16 %v497_v54, %v495_v52  ;;  %v1112_v51 = vpack.c.bf16 %v528_v48, %v526_v47  ;;  %v227_v19 = vrot.slane %v1424_v10, %v226_v44  ;;  %v530_v54 = vld [vmem:[#allocation7 + $0x3e0] sm:$0xff] }
  0xd6   :  { %1123 = vmatprep.subr.bf16.mxu1 %v1122_v57  ;;  %v494_v57 = vld [vmem:[#allocation7 + $0x2c0] sm:$0xff] }
  0xd7   :  { %v1080_v61 = vpack.c.bf16 %v496_v58, %v494_v57 }
  0xd9   :  { %1125 = vmatpush3.bf16.msra.mxu1 %v1124_v62  ;;  %v1082_v62 = vpack.c.bf16 %v501_v60, %v499_v59 }
  0xda   :  { %1127 = vmatprep.subr.bf16.mxu1 %v1126_v63  ;;  %v498_v63 = vld [vmem:[#allocation7 + $0x2e0] sm:$0xff] }
  0xdb   :  { %v1084_v3 = vpack.c.bf16 %v500_v0, %v498_v63  ;;  %v714_v0 = vld [vmem:[#allocation8 + $0xc0] sm:$0xff] }
  0xdd   :  { %1129 = vmatpush3.bf16.msra.mxu1 %v1128_v4  ;;  %v1086_v4 = vpack.c.bf16 %v505_v2, %v503_v1  ;;  %v715_v1 = vld [vmem:[#allocation8 + $0xc8] sm:$0xff] }
  0xde   :  { %1131 = vmatprep.subr.bf16.mxu1 %v1130_v5  ;;  %v502_v5 = vld [vmem:[#allocation7 + $0x300] sm:$0xff]  ;;  %v1134_v2 = vpack.c.bf16 %v715_v1, %v714_v0 }
  0xe1   :  { %1133 = vmatpush3.bf16.msra.mxu1 %v1132_v8  ;;  %v509_v8 = vld [vmem:[#allocation7 + $0x338] sm:$0xff] }
  0xe2   :  { %1135 = vmatprep.subr.bf16.mxu1 %v1134_v2 }
 0x165   :  { %v326_v14 = vpop.f32.mrb[0].mxu1 }
 0x166   :  { %v327_v15 = vadd.f32 %v326_v14, %v219_v12  ;;  %v328_v16 = vpop.f32.mrb[1].mxu1  ;;  %v1088_v12 = vpack.c.bf16 %v504_v6, %v502_v5  ;;  %v506_v14 = vld [vmem:[#allocation7 + $0x320] sm:$0xff]  ;;  %v717_v6 = vld [vmem:[#allocation8 + $0xd8] sm:$0xff] }
 0x167   :  { %v329_v20 = vadd.f32 %v328_v16, %v223_v13  ;;  %v1090_v13 = vpack.c.bf16 %v509_v8, %v507_v7  ;;  %v511_v16 = vld [vmem:[#allocation7 + $0x348] sm:$0xff]  ;;  %v700_v8 = vld [vmem:[#allocation8 + $0x50] sm:$0xff] }
 0x168   :  { %v402_v23 = vmax.f32 %v327_v15, 0.0  ;;  %v508_v15 = vld [vmem:[#allocation7 + $0x330] sm:$0xff] }
 0x169   :  { %v403_v24 = vmax.f32 %v329_v20, 0.0  ;;  %v1092_v18 = vpack.c.bf16 %v508_v15, %v506_v14  ;;  %v1094_v20 = vpack.c.bf16 %v513_v17, %v511_v16  ;;  %v718_v14 = vld [vmem:[#allocation8 + $0xe0] sm:$0xff]  ;;  %v719_v15 = vld [vmem:[#allocation8 + $0xe8] sm:$0xff] }
 0x16a   :  { %v702_v16 = vld [vmem:[#allocation8 + $0x60] sm:$0xff]  ;;  %v1142_v17 = vpack.c.bf16 %v719_v15, %v718_v14 }
 0x16b   :  { %610 = vmatprep.mubr.f32.mxu0 %v403_v24  ;;  %v517_v24 = vld [vmem:[#allocation7 + $0x378] sm:$0xff] }
 0x16c   :  { %611 = vmatmul.mubr.f32.vlgmr.msra.gmra.mrb[0].mxu0 %v402_v23  ;;  %v515_v23 = vld [vmem:[#allocation7 + $0x368] sm:$0xff] }
 0x16d   :  { %1057 = vmatpush1.bf16.msra.mxu0 %v1056_v25  ;;  %v1096_v25 = vpack.c.bf16 %v512_v22, %v510_v21  ;;  %v721_v21 = vld [vmem:[#allocation8 + $0xf8] sm:$0xff] }
 0x16e   :  { %1059 = vmatprep.subr.bf16.mxu0 %v1058_v26  ;;  %v1098_v26 = vpack.c.bf16 %v517_v24, %v515_v23  ;;  %v704_v24 = vld [vmem:[#allocation8 + $0x70] sm:$0xff] }
 0x171   :  { %1061 = vmatpush1.bf16.msra.mxu0 %v1060_v31  ;;  %v1100_v31 = vpack.c.bf16 %v516_v28, %v514_v27  ;;  %v534_v27 = vld [vmem:[%s1465_s4] sm:$0x3] }
 0x172   :  { %1063 = vmatprep.subr.bf16.mxu0 %v1062_v45  ;;  %v1102_v45 = vpack.c.bf16 %v521_v30, %v519_v29  ;;  %v539_v28 = vrot.slane %v534_v27, %v218_v9  ;;  %v543_v29 = vrot.slane %v534_v27, %v222_v11 }
 0x175   :  { %1065 = vmatpush1.bf16.msra.mxu0 %v1064_v36  ;;  %v1104_v36 = vpack.c.bf16 %v520_v32, %v518_v46 }
 0x176   :  { %1067 = vmatprep.subr.bf16.mxu0 %v1066_v37  ;;  %v1106_v37 = vpack.c.bf16 %v525_v35, %v523_v34 }
 0x179   :  { %1069 = vmatpush1.bf16.msra.mxu0 %v1068_v42  ;;  %v1108_v42 = vpack.c.bf16 %v524_v39, %v522_v38 }
 0x17a   :  { %1071 = vmatprep.subr.bf16.mxu0 %v1070_v43  ;;  %v1110_v43 = vpack.c.bf16 %v529_v41, %v527_v40 }
 0x17d   :  { %1073 = vmatpush1.bf16.msra.mxu0 %v1072_v53  ;;  %v531_v53 = vld [vmem:[#allocation7 + $0x3e8] sm:$0xff] }
 0x17e   :  { %1075 = vmatprep.subr.bf16.mxu0 %v1074_v50  ;;  %v533_v50 = vld [vmem:[#allocation7 + $0x3f8] sm:$0xff] }
 0x17f   :  { %v1114_v52 = vpack.c.bf16 %v533_v50, %v531_v53 }
 0x181   :  { %1077 = vmatpush1.bf16.msra.mxu0 %v1076_v55  ;;  %v532_v55 = vld [vmem:[#allocation7 + $0x3f0] sm:$0xff] }
 0x182   :  { %1079 = vmatprep.subr.bf16.mxu0 %v1078_v56  ;;  %v231_v56 = vrot.slane %v1424_v10, %v230_v49  ;;  %v1116_v58 = vpack.c.bf16 %v532_v55, %v530_v54  ;;  %v716_v10 = vld [vmem:[#allocation8 + $0xd0] sm:$0xff] }
 0x183   :  { %v1138_v7 = vpack.c.bf16 %v717_v6, %v716_v10 }
 0x185   :  { %1081 = vmatpush1.bf16.msra.mxu0 %v1080_v61 }
 0x186   :  { %1083 = vmatprep.subr.bf16.mxu0 %v1082_v62 }
 0x189   :  { %1085 = vmatpush1.bf16.msra.mxu0 %v1084_v3  ;;  %v698_v3 = vld [vmem:[#allocation8 + $0x40] sm:$0xff] }
 0x18a   :  { %1087 = vmatprep.subr.bf16.mxu0 %v1086_v4  ;;  %v699_v4 = vld [vmem:[#allocation8 + $0x48] sm:$0xff] }
 0x18b   :  { %v1136_v5 = vpack.c.bf16 %v699_v4, %v698_v3 }
 0x18d   :  { %1089 = vmatpush1.bf16.msra.mxu0 %v1088_v12  ;;  %1137 = vmatpush3.bf16.msra.mxu1 %v1136_v5  ;;  %v701_v12 = vld [vmem:[#allocation8 + $0x58] sm:$0xff] }
 0x18e   :  { %1091 = vmatprep.subr.bf16.mxu0 %v1090_v13  ;;  %v1140_v13 = vpack.c.bf16 %v701_v12, %v700_v8  ;;  %1139 = vmatprep.subr.bf16.mxu1 %v1138_v7 }
 0x191   :  { %1093 = vmatpush1.bf16.msra.mxu0 %v1092_v18  ;;  %1141 = vmatpush3.bf16.msra.mxu1 %v1140_v13  ;;  %v703_v18 = vld [vmem:[#allocation8 + $0x68] sm:$0xff] }
 0x192   :  { %1095 = vmatprep.subr.bf16.mxu0 %v1094_v20  ;;  %v720_v20 = vld [vmem:[#allocation8 + $0xf0] sm:$0xff]  ;;  %v1144_v22 = vpack.c.bf16 %v703_v18, %v702_v16  ;;  %1143 = vmatprep.subr.bf16.mxu1 %v1142_v17 }
 0x193   :  { %v1146_v23 = vpack.c.bf16 %v721_v21, %v720_v20 }
 0x195   :  { %1097 = vmatpush1.bf16.msra.mxu0 %v1096_v25  ;;  %v705_v25 = vld [vmem:[#allocation8 + $0x78] sm:$0xff]  ;;  %1145 = vmatpush3.bf16.msra.mxu1 %v1144_v22 }
 0x196   :  { %1099 = vmatprep.subr.bf16.mxu0 %v1098_v26  ;;  %v1148_v26 = vpack.c.bf16 %v705_v25, %v704_v24  ;;  %1147 = vmatprep.subr.bf16.mxu1 %v1146_v23 }
 0x199   :  { %1101 = vmatpush1.bf16.msra.mxu0 %v1100_v31  ;;  %1149 = vmatpush3.bf16.msra.mxu1 %v1148_v26 }
 0x19a   :  { %1103 = vmatprep.subr.bf16.mxu0 %v1102_v45 }
 0x19d   :  { %1105 = vmatpush1.bf16.msra.mxu0 %v1104_v36  ;;  %v825_v36 = vld [vmem:[%s1467_s6] ss:$0 sm:$0xff] }
 0x19e   :  { %1107 = vmatprep.subr.bf16.mxu0 %v1106_v37 }
 0x1a1   :  { %1109 = vmatpush1.bf16.msra.mxu0 %v1108_v42 }
 0x1a2   :  { %1111 = vmatprep.subr.bf16.mxu0 %v1110_v43 }
 0x1a5   :  { %v397_v57 = vpop.f32.mrb[2].mxu1  ;;  %1113 = vmatpush1.bf16.msra.mxu0 %v1112_v51 }
 0x1a6   :  { %v398_v59 = vadd.f32 %v397_v57, %v227_v19  ;;  %v399_v60 = vpop.f32.mrb[3].mxu1  ;;  %1115 = vmatprep.subr.bf16.mxu0 %v1114_v52 }
 0x1a7   :  { %v400_v61 = vadd.f32 %v399_v60, %v231_v56 }
 0x1a8   :  { %v404_v63 = vmax.f32 %v398_v59, 0.0 }
 0x1a9   :  { %v405_v62 = vmax.f32 %v400_v61, 0.0  ;;  %1117 = vmatpush1.bf16.msra.mxu0 %v1116_v58 }
 0x1ab   :  { %681 = vmatprep.mubr.f32.mxu0 %v405_v62 }
 0x1ac   :  { %682 = vmatmul.mubr.f32.vlgmr.msra.gmra.mrb[0].mxu0 %v404_v63 }
 0x27f   :  { %v683_v30 = vpop.f32.mrb[0].mxu0 }
 0x280   :  { %v1150_v31 = vadd.f32 %v683_v30, %v539_v28  ;;  %v685_v45 = vpop.f32.mrb[1].mxu0 }
 0x281   :  { %v1151_v46 = vadd.f32 %v685_v45, %v543_v29 }
 0x283   :  { %1171 = vtanh.f32 %v1151_v46 }
 0x284   :  { %1173 = vtanh.f32 %v1150_v31 }
 0x28d   :  { %v1172_v32 = vpop.eup %1171 }
 0x28e   :  { %v1174_v34 = vpop.eup %1173  ;;  %793 = vmatprep.mubr.f32.mxu1 %v1172_v32 }
 0x28f   :  { %794 = vmatmul.mubr.f32.vlgmr.msra.gmra.mrb[4].mxu1 %v1174_v34 }
 0x362   :  { %v859_v35 = vpop.f32.mrb[4].mxu1 }
 0x363   :  { %v860_v37 = vpop.f32.mrb[5].mxu1 }
 0x364   :  { %v861_v9 = vadd.f32 %v860_v37, %v859_v35 }
 0x366   :  { %v796_v38 = vadd.f32 %v861_v9, %v825_v36 }
 0x368   :  { %v826_v33 = vmul.f32 -1.442695, %v796_v38 }
 0x36a   :  { %1175 = vpow2.f32 %v826_v33 }
 0x374   :  { %v1176_v11 = vpop.eup %1175 }
 0x375   :  { %v802_v39 = vadd.f32 1.0, %v1176_v11 }
 0x377   :  { %1177 = vrcp.f32 %v802_v39 }
 0x381   :  { %v1178_v40 = vpop.eup %1177 }
 0x382   :  { %805 = vst [vmem:[#allocation10] sm:$0xff] %v1178_v40 }
 0x383   :  { %810 = vsyncadd [#allocation4], 96  ;;  %s1311_s4 = smov [#allocation10]  }
 0x384   :  { %s811_s14 = sshll.u32 %s1311_s4, 4  ;;  %s812_s14 = int_to_ptr.vmem [resolvable:$true] %s811_s14 }
 0x385   :  { %s1269_s15 = scalar_lea.vmem %s812_s14, 32  ;;  %s1273_s17 = scalar_lea.vmem %s812_s14, 128 }
 0x386   :  { %p1270_p4 = scmp.ne.s32.totalorder %s812_s14, %s1269_s15  ;;  %p1274_p5 = scmp.lt.s32.totalorder %s812_s14, %s812_s14 }
 0x387   :  { %p1275_p6 = scmp.lt.s32.totalorder %s1273_s17, %s1269_s15 }
 0x389   :  { %p1276_p7 = por %p1275_p6, %p1274_p5 }
 0x38b   :  { %p1277_p8 = pnand %p1276_p7, %p1270_p4 }
 0x38d   :  { %1280 = shalt.err (!%p1277_p8)
}
 0x38e   :  { %s1281_s16 = scalar_lea.hbm %s1468_s7, 32 }
 0x38f   :  { %p1282_p9 = scmp.ne.s32.totalorder %s1468_s7, %s1281_s16  ;;  %p1285_p10 = scmp.lt.u32.totalorder %s1281_s16, %s1468_s7 }
 0x391   :  { %p1287_p11 = pnand %p1285_p10, %p1282_p9 }
 0x393   :  { %1290 = shalt.err (!%p1287_p11)
}
 0x394   :  { %s1312_s22 = smov 2  }
 0x395   :  { %817 = dma.vmem_to_hbm [thread:$0]  %s812_s14, 32, %s1468_s7, [#allocation4], %s1301_s12, %s1301_s12, %s1312_s22  }
 0x396   :  { %1297 = dma.done.wait [#allocation4], 128  }
 0x397   :  { %1298 = vsyncadd [#allocation4], 4294967168 }
 0x398   :  { %821 = vsyncpa [#allocation3], 1 }
 0x399   :  { %822 = vsyncpa [#allocation6], 1 }
 0x39a   :  { %823 = vsyncpa [#allocation9], 1 }
 0x39b   :  { %824 = vsyncpa [#allocation4], 1 }

</bundles_post_ra>
